<compile_context>
chip_gen: v5e
topology: v5e:2x2
jax: 0.10.0
libtpu: 0.0.40
codegen_flags: <defaults>
</compile_context>

<pallas_src>
import jax
import jax.numpy as jnp
from jax.experimental import pallas as pl
from jax.experimental.pallas import tpu as pltpu


def _round_up(x, m):
    return (x + m - 1) // m * m


# ---- kernel 1: neighbor-feature projection  support = x @ W_ne --------------
def _support_kernel(x_ref, wne_ref, sup_ref):
    sup_ref[...] = jnp.dot(
        x_ref[...], wne_ref[...], preferred_element_type=jnp.float32
    ).astype(sup_ref.dtype)


# ---- kernel 2: streamed aggregation  out = adj @ support + x @ W_self, PReLU -
def _agg_kernel(alpha_ref, adj_ref, sup_ref, x_ref, wself_ref, out_ref):
    k = pl.program_id(1)
    tile_k = adj_ref.shape[1]

    @pl.when(k == 0)
    def _():
        # Initialize the resident f32 output block with the self projection.
        out_ref[...] = jnp.dot(
            x_ref[...], wself_ref[...], preferred_element_type=jnp.float32
        )

    if sup_ref.shape[0] == tile_k:
        sup = sup_ref[...]                               # streamed (k, 0) tile
    else:
        start = pl.multiple_of(k * tile_k, tile_k)       # resident: slice rows
        sup = sup_ref[pl.ds(start, tile_k), :]

    out_ref[...] += jnp.dot(adj_ref[...], sup, preferred_element_type=jnp.float32)

    @pl.when(k == pl.num_programs(1) - 1)
    def _():
        alpha = alpha_ref[0]                             # scalar PReLU slope
        acc = out_ref[...]                               # f32 epilogue
        out_ref[...] = jnp.where(acc >= 0, acc, alpha * acc)


def graph_convolution(adj, x, w_ne, w_self, alpha, *, tile_m=256, tile_k=512,
                      resident_support_bytes=12 * 1024 * 1024):
    """GCN layer forward. adj:[N,N], x:[N,Fin], w_*:[Fin,Fout], alpha: PReLU slope."""
    assert tile_m % 8 == 0 and tile_k % 128 == 0 and tile_k % tile_m == 0

    n, f_in = x.shape
    f_out = w_ne.shape[1]
    f_out_p = _round_up(f_out, 128)        # lane-dense output slab (do NOT pad past 128)

    # Rectangular padding: rows -> tile_m, reduction/cols -> tile_k (no lcm blow-up).
    n_pm = _round_up(n, tile_m)            # row axis (out / adj rows)
    n_pk = _round_up(n, tile_k)            # reduction axis (adj cols / support rows)
    # tile_m | tile_k  =>  n_pm <= n_pk, so one x pad (n_pk rows) serves both kernels.

    # Cast BEFORE padding so the padded copy of the big tensors is bf16, not f32.
    adj_b = jnp.pad(adj.astype(jnp.bfloat16), ((0, n_pm - n), (0, n_pk - n)))
    x_b = jnp.pad(x.astype(jnp.bfloat16), ((0, n_pk - n), (0, 0)))
    w_ne_b = jnp.pad(w_ne.astype(jnp.bfloat16), ((0, 0), (0, f_out_p - f_out)))
    w_self_b = jnp.pad(w_self.astype(jnp.bfloat16), ((0, 0), (0, f_out_p - f_out)))

    grid_m = n_pm // tile_m
    grid_k = n_pk // tile_k

    # ---- kernel 1: support = x @ W_ne  (bf16, feeds the MXU in kernel 2) -----
    tile_p = tile_k                        # 512-row projection tiles (divides n_pk)
    support = pl.pallas_call(
        _support_kernel,
        out_shape=jax.ShapeDtypeStruct((n_pk, f_out_p), jnp.bfloat16),
        grid=(n_pk // tile_p,),
        in_specs=[
            pl.BlockSpec((tile_p, f_in), lambda i: (i, 0)),
            pl.BlockSpec((f_in, f_out_p), lambda i: (0, 0)),       # W_ne resident
        ],
        out_specs=pl.BlockSpec((tile_p, f_out_p), lambda i: (i, 0)),
        compiler_params=pltpu.CompilerParams(
            dimension_semantics=("parallel",),
        ),
        cost_estimate=pl.CostEstimate(
            flops=2 * n_pk * f_in * f_out_p,
            transcendentals=0,
            bytes_accessed=(n_pk * f_in * 2 + f_in * f_out_p * 2
                            + n_pk * f_out_p * 2),
        ),
    )(x_b, w_ne_b)

    # ---- kernel 2: adj-streaming aggregation + self path + PReLU -------------
    sup_bytes = n_pk * f_out_p * 2
    resident = sup_bytes <= resident_support_bytes
    if resident:
        sup_spec = pl.BlockSpec((n_pk, f_out_p), lambda i, k: (0, 0))   # VMEM-resident
        sup_traffic = sup_bytes
    else:
        sup_spec = pl.BlockSpec((tile_k, f_out_p), lambda i, k: (k, 0))  # streamed
        sup_traffic = grid_m * sup_bytes

    sup_block_rows = n_pk if resident else tile_k
    vmem_est = (2 * sup_block_rows * f_out_p * 2       # support (double-buffered)
                + 2 * tile_m * tile_k * 2              # adj tiles
                + 2 * tile_m * f_in * 2                # x row tiles
                + 2 * tile_m * f_out_p * 4             # out block
                + 2 * f_in * f_out_p * 2               # W_self
                + (1 << 20))
    vmem_limit = int(max(vmem_est, 32 * 1024 * 1024))  # <=~26 MiB here; v7x-safe

    alpha_arr = jnp.asarray([alpha], dtype=jnp.float32)
    out_p = pl.pallas_call(
        _agg_kernel,
        out_shape=jax.ShapeDtypeStruct((n_pm, f_out_p), jnp.float32),
        grid=(grid_m, grid_k),
        in_specs=[
            pl.BlockSpec(memory_space=pltpu.MemorySpace.SMEM),        # alpha (scalar)
            pl.BlockSpec((tile_m, tile_k), lambda i, k: (i, k)),      # adj stream
            sup_spec,                                                 # support
            pl.BlockSpec((tile_m, f_in), lambda i, k: (i, 0)),        # x row tile
            pl.BlockSpec((f_in, f_out_p), lambda i, k: (0, 0)),       # W_self resident
        ],
        out_specs=pl.BlockSpec((tile_m, f_out_p), lambda i, k: (i, 0)),
        compiler_params=pltpu.CompilerParams(
            dimension_semantics=("parallel", "arbitrary"),
            vmem_limit_bytes=vmem_limit,
        ),
        cost_estimate=pl.CostEstimate(
            flops=2 * n_pm * n_pk * f_out_p + 2 * n_pm * f_in * f_out_p,
            transcendentals=0,
            bytes_accessed=(n_pm * n_pk * 2 + sup_traffic + n_pm * f_in * 2
                            + f_in * f_out_p * 2 + n_pm * f_out_p * 4),
        ),
    )(alpha_arr, adj_b, support, x_b, w_self_b)

    return out_p[:n, :f_out]


def xavier_uniform(key, fan_in, fan_out, dtype=jnp.float32):
    bound = (6.0 / (fan_in + fan_out)) ** 0.5
    return jax.random.uniform(key, (fan_in, fan_out), dtype, -bound, bound)


def reference(adj, x, w_ne, w_self, alpha):
    support = x @ w_ne
    out = adj @ support + x @ w_self
    return jnp.where(out >= 0, out, alpha * out)


if __name__ == "__main__":
    # Small deterministic setup: 512 nodes, in_features=64, out_features=96
    # (exercises the row-tile grid, the reduction axis, and F_out lane padding).
    N, F_IN, F_OUT = 512, 64, 96
    key = jax.random.PRNGKey(0)
    k_adj, k_x, k_wne, k_wself = jax.random.split(key, 4)

    # Symmetric row-normalized-ish adjacency (dense), node features.
    a = jax.random.uniform(k_adj, (N, N), jnp.float32)
    adj = (a + a.T) * 0.5 / N
    x = jax.random.normal(k_x, (N, F_IN), jnp.float32)

    # Deterministic parameter init (xavier_uniform, as in reset_parameters).
    w_ne = xavier_uniform(k_wne, F_IN, F_OUT)
    w_self = xavier_uniform(k_wself, F_IN, F_OUT)
    alpha = 0.25  # PReLU slope (nn.PReLU default init)

    out = graph_convolution(adj, x, w_ne, w_self, alpha)
    out = jax.block_until_ready(out)

    ref = reference(adj, x, w_ne, w_self, alpha)
    assert out.shape == (N, F_OUT)
    # bf16 matmul inputs / f32 accumulation -> loosened tolerance vs f32 reference.
    rel_err = float(jnp.max(jnp.abs(out - ref)) / (jnp.max(jnp.abs(ref)) + 1e-6))
    assert rel_err < 2e-2, f"mismatch vs reference, rel_err={rel_err}"

    print("KERNEL_OK")
</pallas_src>

<mosaic_0001>
module attributes {stable_mosaic.version = 11 : i64} {
  func.func @_support_kernel(%arg0: i32, %arg1: memref<512x64xbf16, #tpu.memory_space<vmem>>, %arg2: memref<64x128xbf16, #tpu.memory_space<vmem>>, %arg3: memref<512x128xbf16, #tpu.memory_space<vmem>>) attributes {dimension_semantics = [#tpu.dimension_semantics<parallel>], iteration_bounds = array<i64: 1>, scalar_prefetch = 0 : i64, scratch_operands = 0 : i64, tpu.core_type = #tpu.core_type<tc>, window_params = [{transform_indices = @transform_0, window_bounds = array<i64: 512, 64>}, {pipeline_mode = #tpu.pipeline_mode<synchronous>, transform_indices = @transform_1, window_bounds = array<i64: 64, 128>}, {transform_indices = @transform_2, window_bounds = array<i64: 512, 128>}]} {
    %c0 = arith.constant 0 : index
    %c0_0 = arith.constant 0 : index
    %0 = vector.load %arg1[%c0, %c0_0] : memref<512x64xbf16, #tpu.memory_space<vmem>>, vector<512x64xbf16>
    %c0_1 = arith.constant 0 : index
    %c0_2 = arith.constant 0 : index
    %1 = vector.load %arg2[%c0_1, %c0_2] : memref<64x128xbf16, #tpu.memory_space<vmem>>, vector<64x128xbf16>
    %cst = arith.constant dense<0.000000e+00> : vector<512x128xf32>
    %2 = tpu.matmul %0, %1, %cst {dimension_numbers = #tpu.dot_dimension_numbers<[1], [0], [0], [1], [0, 0, 1, 1], [], []>} : vector<512x64xbf16>, vector<64x128xbf16>, vector<512x128xf32> -> vector<512x128xf32>
    %3 = arith.truncf %2 : vector<512x128xf32> to vector<512x128xbf16>
    %c0_3 = arith.constant 0 : index
    %c0_4 = arith.constant 0 : index
    %4 = vector.load %arg3[%c0_3, %c0_4] : memref<512x128xbf16, #tpu.memory_space<vmem>>, vector<512x128xbf16>
    tpu.vector_store %arg3[%c0_3, %c0_4], %3 {strides = array<i32>} : memref<512x128xbf16, #tpu.memory_space<vmem>>, vector<512x128xbf16>,
    return
  }
  func.func @transform_0(%arg0: i32) -> (i32, i32) {
    %c0_i32 = arith.constant 0 : i32
    %c0_i32_0 = arith.constant 0 : i32
    return %arg0, %c0_i32 : i32, i32
  }
  func.func @transform_1(%arg0: i32) -> (i32, i32) {
    %c0_i32 = arith.constant 0 : i32
    %c0_i32_0 = arith.constant 0 : i32
    %c0_i32_1 = arith.constant 0 : i32
    return %c0_i32, %c0_i32_0 : i32, i32
  }
  func.func @transform_2(%arg0: i32) -> (i32, i32) {
    %c0_i32 = arith.constant 0 : i32
    %c0_i32_0 = arith.constant 0 : i32
    return %arg0, %c0_i32 : i32, i32
  }
}

</mosaic_0001>

<bundles_post_ra>
// kernel: tpu_custom_call.1
= control target key start
LH: loop header
LB: loop body
LE: loop exit
PB: predicated region body
PF: predicated region fallthrough
CT: control target
= control target key end

     0   :  { %s1286_s0 = inlined_call_operand.vmem [shape: bf16[512,64], index: 0, kind: input, shape index: {}]   ;;  %s1287_s1 = inlined_call_operand.vmem [shape: bf16[64,128], index: 1, kind: input, shape index: {}]   ;;  %s1288_s2 = inlined_call_operand.hbm [shape: bf16[512,128], index: 2, kind: output, shape index: {}]  }
   0x1   :  { %v892_v0 = vld [vmem:[%s1287_s1 + $0x18] sm:$0xff]  ;;  %v891_v1 = vld [vmem:[%s1287_s1 + $0x10] sm:$0xff] }
   0x2   :  { %370 = vmatpush.bf16.msra.mxu0 %v892_v0  ;;  %1084 = vmatpush.bf16.msra.mxu1 %v892_v0 }
   0x3   :  { %1085 = vmatpush.bf16.msra.mxu2 %v892_v0  ;;  %1086 = vmatpush.bf16.msra.mxu3 %v892_v0 }
   0x4   :  { %7 = vsyncpa [#allocation3], 0  ;;  %v890_v2 = vld [vmem:[%s1287_s1 + $0x8] sm:$0xff]  ;;  %v889_v3 = vld [vmem:[%s1287_s1] sm:$0xff]  ;;  %vm269_vm0 = vcmask 523264   ;;  %s669_s25 = sshll.u32 %s1288_s2, 4  ;;  %s670_s25 = int_to_ptr.hbm [resolvable:$true] %s669_s25 }
   0x5   :  { %v857_v4 = vld [vmem:[%s1286_s0] sm:$0xff]  ;;  %v858_v8 = vld [vmem:[%s1286_s0 + $0x8] sm:$0xff]  ;;  %v859_v12 = vld [vmem:[%s1286_s0 + $0x10] sm:$0xff]  ;;  %s1126_s26 = smov 64   ;;  %s1127_s27 = smov 4  }
   0x6   :  { %371 = vmatpush.bf16.msra.mxu0 %v891_v1  ;;  %1087 = vmatpush.bf16.msra.mxu1 %v891_v1  ;;  %v865_v5 = vld [vmem:[%s1286_s0 + $0x40] sm:$0xff]  ;;  %v866_v9 = vld [vmem:[%s1286_s0 + $0x48] sm:$0xff]  ;;  %v867_v13 = vld [vmem:[%s1286_s0 + $0x50] sm:$0xff] }
   0x7   :  { %1088 = vmatpush.bf16.msra.mxu2 %v891_v1  ;;  %1089 = vmatpush.bf16.msra.mxu3 %v891_v1  ;;  %v873_v6 = vld [vmem:[%s1286_s0 + $0x80] sm:$0xff]  ;;  %v874_v10 = vld [vmem:[%s1286_s0 + $0x88] sm:$0xff]  ;;  %v875_v14 = vld [vmem:[%s1286_s0 + $0x90] sm:$0xff] }
   0x8   :  { %v881_v7 = vld [vmem:[%s1286_s0 + $0xc0] sm:$0xff]  ;;  %v882_v11 = vld [vmem:[%s1286_s0 + $0xc8] sm:$0xff]  ;;  %v883_v15 = vld [vmem:[%s1286_s0 + $0xd0] sm:$0xff] }
   0x9   :  { %v860_v16 = vld [vmem:[%s1286_s0 + $0x18] sm:$0xff]  ;;  %v861_v20 = vld [vmem:[%s1286_s0 + $0x20] sm:$0xff]  ;;  %v862_v24 = vld [vmem:[%s1286_s0 + $0x28] sm:$0xff] }
   0xa   :  { %372 = vmatpush.bf16.msra.mxu0 %v890_v2  ;;  %1090 = vmatpush.bf16.msra.mxu1 %v890_v2  ;;  %v868_v17 = vld [vmem:[%s1286_s0 + $0x58] sm:$0xff]  ;;  %v869_v21 = vld [vmem:[%s1286_s0 + $0x60] sm:$0xff]  ;;  %v870_v25 = vld [vmem:[%s1286_s0 + $0x68] sm:$0xff] }
   0xb   :  { %1091 = vmatpush.bf16.msra.mxu2 %v890_v2  ;;  %1092 = vmatpush.bf16.msra.mxu3 %v890_v2  ;;  %v876_v18 = vld [vmem:[%s1286_s0 + $0x98] sm:$0xff]  ;;  %v877_v22 = vld [vmem:[%s1286_s0 + $0xa0] sm:$0xff]  ;;  %v878_v26 = vld [vmem:[%s1286_s0 + $0xa8] sm:$0xff] }
   0xc   :  { %v884_v19 = vld [vmem:[%s1286_s0 + $0xd8] sm:$0xff]  ;;  %v885_v23 = vld [vmem:[%s1286_s0 + $0xe0] sm:$0xff]  ;;  %v886_v27 = vld [vmem:[%s1286_s0 + $0xe8] sm:$0xff] }
   0xd   :  { %v863_v28 = vld [vmem:[%s1286_s0 + $0x30] sm:$0xff]  ;;  %v864_v32 = vld [vmem:[%s1286_s0 + $0x38] sm:$0xff] }
   0xe   :  { %373 = vmatpush.bf16.msra.mxu0 %v889_v3  ;;  %1093 = vmatpush.bf16.msra.mxu1 %v889_v3  ;;  %v871_v29 = vld [vmem:[%s1286_s0 + $0x70] sm:$0xff]  ;;  %v872_v33 = vld [vmem:[%s1286_s0 + $0x78] sm:$0xff] }
   0xf   :  { %1094 = vmatpush.bf16.msra.mxu2 %v889_v3  ;;  %1095 = vmatpush.bf16.msra.mxu3 %v889_v3  ;;  %v879_v30 = vld [vmem:[%s1286_s0 + $0xb0] sm:$0xff]  ;;  %v880_v34 = vld [vmem:[%s1286_s0 + $0xb8] sm:$0xff] }
  0x10   :  { %v887_v31 = vld [vmem:[%s1286_s0 + $0xf0] sm:$0xff]  ;;  %v888_v35 = vld [vmem:[%s1286_s0 + $0xf8] sm:$0xff]  ;;  %s1125_s0 = smov [#allocation2]  }
  0x11   :  { %825 = vmatmul.msk.bf16.vlgmr.msra.gmra.mxu0 %vm269_vm0, %v857_v4  ;;  %833 = vmatmul.msk.bf16.vlgmr.msra.gmra.mxu1 %vm269_vm0, %v865_v5  ;;  %s667_s23 = sshll.u32 %s1125_s0, 4  ;;  %s668_s23 = int_to_ptr.vmem [resolvable:$true] %s667_s23 }
  0x12   :  { %841 = vmatmul.msk.bf16.vlgmr.msra.gmra.mxu2 %vm269_vm0, %v873_v6  ;;  %849 = vmatmul.msk.bf16.vlgmr.msra.gmra.mxu3 %vm269_vm0, %v881_v7 }
  0x21   :  { %826 = vmatmul.msk.bf16.gmra.mxu0 %vm269_vm0, %v858_v8  ;;  %834 = vmatmul.msk.bf16.gmra.mxu1 %vm269_vm0, %v866_v9 }
  0x22   :  { %842 = vmatmul.msk.bf16.gmra.mxu2 %vm269_vm0, %v874_v10  ;;  %850 = vmatmul.msk.bf16.gmra.mxu3 %vm269_vm0, %v882_v11 }
  0x31   :  { %827 = vmatmul.msk.bf16.gmra.mxu0 %vm269_vm0, %v859_v12  ;;  %835 = vmatmul.msk.bf16.gmra.mxu1 %vm269_vm0, %v867_v13 }
  0x32   :  { %843 = vmatmul.msk.bf16.gmra.mxu2 %vm269_vm0, %v875_v14  ;;  %851 = vmatmul.msk.bf16.gmra.mxu3 %vm269_vm0, %v883_v15 }
  0x41   :  { %828 = vmatmul.msk.bf16.gmra.mxu0 %vm269_vm0, %v860_v16  ;;  %836 = vmatmul.msk.bf16.gmra.mxu1 %vm269_vm0, %v868_v17 }
  0x42   :  { %844 = vmatmul.msk.bf16.gmra.mxu2 %vm269_vm0, %v876_v18  ;;  %852 = vmatmul.msk.bf16.gmra.mxu3 %vm269_vm0, %v884_v19 }
  0x51   :  { %829 = vmatmul.msk.bf16.gmra.mxu0 %vm269_vm0, %v861_v20  ;;  %837 = vmatmul.msk.bf16.gmra.mxu1 %vm269_vm0, %v869_v21 }
  0x52   :  { %845 = vmatmul.msk.bf16.gmra.mxu2 %vm269_vm0, %v877_v22  ;;  %853 = vmatmul.msk.bf16.gmra.mxu3 %vm269_vm0, %v885_v23 }
  0x61   :  { %830 = vmatmul.msk.bf16.gmra.mxu0 %vm269_vm0, %v862_v24  ;;  %838 = vmatmul.msk.bf16.gmra.mxu1 %vm269_vm0, %v870_v25 }
  0x62   :  { %846 = vmatmul.msk.bf16.gmra.mxu2 %vm269_vm0, %v878_v26  ;;  %854 = vmatmul.msk.bf16.gmra.mxu3 %vm269_vm0, %v886_v27 }
  0x71   :  { %831 = vmatmul.msk.bf16.gmra.mxu0 %vm269_vm0, %v863_v28  ;;  %839 = vmatmul.msk.bf16.gmra.mxu1 %vm269_vm0, %v871_v29 }
  0x72   :  { %847 = vmatmul.msk.bf16.gmra.mxu2 %vm269_vm0, %v879_v30  ;;  %855 = vmatmul.msk.bf16.gmra.mxu3 %vm269_vm0, %v887_v31 }
  0x81   :  { %832 = vmatmul.msk.bf16.gmra.mxu0 %vm269_vm0, %v864_v32  ;;  %840 = vmatmul.msk.bf16.gmra.mxu1 %vm269_vm0, %v872_v33 }
  0x82   :  { %848 = vmatmul.msk.bf16.gmra.mxu2 %vm269_vm0, %v880_v34  ;;  %856 = vmatmul.msk.bf16.gmra.mxu3 %vm269_vm0, %v888_v35 }
  0x8e   :  { %v375_v36 = vpop.f32.mrf.mxu0  ;;  %v415_v37 = vpop.f32.mrf.mxu1 }
  0x95   :  { %v455_v38 = vpop.f32.mrf.mxu2  ;;  %v495_v39 = vpop.f32.mrf.mxu3 }
  0x96   :  { %v377_v40 = vpop.f32.mrf.mxu0  ;;  %v417_v41 = vpop.f32.mrf.mxu1 }
  0x97   :  { %v896_v42 = vpack.c.bf16 %v377_v40, %v375_v36  ;;  %v936_v43 = vpack.c.bf16 %v417_v41, %v415_v37 }
  0x99   :  { %897 = vst [vmem:[#allocation2] sm:$0xff] %v896_v42  }
  0x9a   :  { %1060 = vst [vmem:[#allocation2 + $0x40] sm:$0xff] %v936_v43  }
  0x9d   :  { %v457_v44 = vpop.f32.mrf.mxu2  ;;  %v497_v45 = vpop.f32.mrf.mxu3 }
  0x9e   :  { %v976_v46 = vpack.c.bf16 %v457_v44, %v455_v38  ;;  %v1016_v47 = vpack.c.bf16 %v497_v45, %v495_v39  ;;  %v380_v48 = vpop.f32.mrf.mxu0  ;;  %v420_v49 = vpop.f32.mrf.mxu1 }
  0xa0   :  { %1068 = vst [vmem:[#allocation2 + $0x80] sm:$0xff] %v976_v46  }
  0xa1   :  { %1076 = vst [vmem:[#allocation2 + $0xc0] sm:$0xff] %v1016_v47  }
  0xa5   :  { %v460_v50 = vpop.f32.mrf.mxu2  ;;  %v500_v51 = vpop.f32.mrf.mxu3 }
  0xa6   :  { %v382_v52 = vpop.f32.mrf.mxu0  ;;  %v422_v53 = vpop.f32.mrf.mxu1 }
  0xa7   :  { %v901_v54 = vpack.c.bf16 %v382_v52, %v380_v48  ;;  %v941_v55 = vpack.c.bf16 %v422_v53, %v420_v49 }
  0xa9   :  { %1053 = vst [vmem:[#allocation2 + $0x8] sm:$0xff] %v901_v54  }
  0xaa   :  { %1061 = vst [vmem:[#allocation2 + $0x48] sm:$0xff] %v941_v55  }
  0xad   :  { %v462_v56 = vpop.f32.mrf.mxu2  ;;  %v502_v57 = vpop.f32.mrf.mxu3 }
  0xae   :  { %v981_v58 = vpack.c.bf16 %v462_v56, %v460_v50  ;;  %v1021_v59 = vpack.c.bf16 %v502_v57, %v500_v51  ;;  %v385_v60 = vpop.f32.mrf.mxu0  ;;  %v425_v61 = vpop.f32.mrf.mxu1 }
  0xb0   :  { %1069 = vst [vmem:[#allocation2 + $0x88] sm:$0xff] %v981_v58  }
  0xb1   :  { %1077 = vst [vmem:[#allocation2 + $0xc8] sm:$0xff] %v1021_v59  }
  0xb5   :  { %v465_v62 = vpop.f32.mrf.mxu2  ;;  %v505_v63 = vpop.f32.mrf.mxu3 }
  0xb6   :  { %v387_v0 = vpop.f32.mrf.mxu0  ;;  %v427_v1 = vpop.f32.mrf.mxu1 }
  0xb7   :  { %v906_v2 = vpack.c.bf16 %v387_v0, %v385_v60  ;;  %v946_v3 = vpack.c.bf16 %v427_v1, %v425_v61 }
  0xb9   :  { %1054 = vst [vmem:[#allocation2 + $0x10] sm:$0xff] %v906_v2  }
  0xba   :  { %1062 = vst [vmem:[#allocation2 + $0x50] sm:$0xff] %v946_v3  }
  0xbd   :  { %v467_v4 = vpop.f32.mrf.mxu2  ;;  %v507_v5 = vpop.f32.mrf.mxu3 }
  0xbe   :  { %v986_v6 = vpack.c.bf16 %v467_v4, %v465_v62  ;;  %v1026_v7 = vpack.c.bf16 %v507_v5, %v505_v63  ;;  %v390_v8 = vpop.f32.mrf.mxu0  ;;  %v430_v9 = vpop.f32.mrf.mxu1 }
  0xc0   :  { %1070 = vst [vmem:[#allocation2 + $0x90] sm:$0xff] %v986_v6  }
  0xc1   :  { %1078 = vst [vmem:[#allocation2 + $0xd0] sm:$0xff] %v1026_v7  }
  0xc5   :  { %v470_v10 = vpop.f32.mrf.mxu2  ;;  %v510_v11 = vpop.f32.mrf.mxu3 }
  0xc6   :  { %v392_v12 = vpop.f32.mrf.mxu0  ;;  %v432_v13 = vpop.f32.mrf.mxu1 }
  0xc7   :  { %v911_v14 = vpack.c.bf16 %v392_v12, %v390_v8  ;;  %v951_v15 = vpack.c.bf16 %v432_v13, %v430_v9 }
  0xc9   :  { %1055 = vst [vmem:[#allocation2 + $0x18] sm:$0xff] %v911_v14  }
  0xca   :  { %1063 = vst [vmem:[#allocation2 + $0x58] sm:$0xff] %v951_v15  }
  0xcd   :  { %v472_v16 = vpop.f32.mrf.mxu2  ;;  %v512_v17 = vpop.f32.mrf.mxu3 }
  0xce   :  { %v991_v18 = vpack.c.bf16 %v472_v16, %v470_v10  ;;  %v1031_v19 = vpack.c.bf16 %v512_v17, %v510_v11  ;;  %v395_v20 = vpop.f32.mrf.mxu0  ;;  %v435_v21 = vpop.f32.mrf.mxu1 }
  0xd0   :  { %1071 = vst [vmem:[#allocation2 + $0x98] sm:$0xff] %v991_v18  }
  0xd1   :  { %1079 = vst [vmem:[#allocation2 + $0xd8] sm:$0xff] %v1031_v19  }
  0xd5   :  { %v475_v22 = vpop.f32.mrf.mxu2  ;;  %v515_v23 = vpop.f32.mrf.mxu3 }
  0xd6   :  { %v397_v24 = vpop.f32.mrf.mxu0  ;;  %v437_v25 = vpop.f32.mrf.mxu1 }
  0xd7   :  { %v916_v26 = vpack.c.bf16 %v397_v24, %v395_v20  ;;  %v956_v27 = vpack.c.bf16 %v437_v25, %v435_v21 }
  0xd9   :  { %1056 = vst [vmem:[#allocation2 + $0x20] sm:$0xff] %v916_v26  }
  0xda   :  { %1064 = vst [vmem:[#allocation2 + $0x60] sm:$0xff] %v956_v27  }
  0xdd   :  { %v477_v28 = vpop.f32.mrf.mxu2  ;;  %v517_v29 = vpop.f32.mrf.mxu3 }
  0xde   :  { %v996_v30 = vpack.c.bf16 %v477_v28, %v475_v22  ;;  %v1036_v31 = vpack.c.bf16 %v517_v29, %v515_v23  ;;  %v400_v32 = vpop.f32.mrf.mxu0  ;;  %v440_v33 = vpop.f32.mrf.mxu1 }
  0xe0   :  { %1072 = vst [vmem:[#allocation2 + $0xa0] sm:$0xff] %v996_v30  }
  0xe1   :  { %1080 = vst [vmem:[#allocation2 + $0xe0] sm:$0xff] %v1036_v31  }
  0xe5   :  { %v480_v34 = vpop.f32.mrf.mxu2  ;;  %v520_v35 = vpop.f32.mrf.mxu3 }
  0xe6   :  { %v402_v36 = vpop.f32.mrf.mxu0  ;;  %v442_v37 = vpop.f32.mrf.mxu1 }
  0xe7   :  { %v921_v38 = vpack.c.bf16 %v402_v36, %v400_v32  ;;  %v961_v39 = vpack.c.bf16 %v442_v37, %v440_v33 }
  0xe9   :  { %1057 = vst [vmem:[#allocation2 + $0x28] sm:$0xff] %v921_v38  }
  0xea   :  { %1065 = vst [vmem:[#allocation2 + $0x68] sm:$0xff] %v961_v39  }
  0xed   :  { %v482_v40 = vpop.f32.mrf.mxu2  ;;  %v522_v41 = vpop.f32.mrf.mxu3 }
  0xee   :  { %v1001_v42 = vpack.c.bf16 %v482_v40, %v480_v34  ;;  %v1041_v43 = vpack.c.bf16 %v522_v41, %v520_v35  ;;  %v405_v44 = vpop.f32.mrf.mxu0  ;;  %v445_v45 = vpop.f32.mrf.mxu1 }
  0xf0   :  { %1073 = vst [vmem:[#allocation2 + $0xa8] sm:$0xff] %v1001_v42  }
  0xf1   :  { %1081 = vst [vmem:[#allocation2 + $0xe8] sm:$0xff] %v1041_v43  }
  0xf5   :  { %v485_v46 = vpop.f32.mrf.mxu2  ;;  %v525_v47 = vpop.f32.mrf.mxu3 }
  0xf6   :  { %v407_v48 = vpop.f32.mrf.mxu0  ;;  %v447_v49 = vpop.f32.mrf.mxu1 }
  0xf7   :  { %v926_v50 = vpack.c.bf16 %v407_v48, %v405_v44  ;;  %v966_v51 = vpack.c.bf16 %v447_v49, %v445_v45 }
  0xf9   :  { %1058 = vst [vmem:[#allocation2 + $0x30] sm:$0xff] %v926_v50  }
  0xfa   :  { %1066 = vst [vmem:[#allocation2 + $0x70] sm:$0xff] %v966_v51  }
  0xfd   :  { %v487_v52 = vpop.f32.mrf.mxu2  ;;  %v527_v53 = vpop.f32.mrf.mxu3 }
  0xfe   :  { %v1006_v54 = vpack.c.bf16 %v487_v52, %v485_v46  ;;  %v1046_v55 = vpack.c.bf16 %v527_v53, %v525_v47  ;;  %v410_v56 = vpop.f32.mrf.mxu0  ;;  %v450_v57 = vpop.f32.mrf.mxu1 }
 0x100   :  { %1074 = vst [vmem:[#allocation2 + $0xb0] sm:$0xff] %v1006_v54  }
 0x101   :  { %1082 = vst [vmem:[#allocation2 + $0xf0] sm:$0xff] %v1046_v55  }
 0x105   :  { %v490_v58 = vpop.f32.mrf.mxu2  ;;  %v530_v59 = vpop.f32.mrf.mxu3 }
 0x106   :  { %v412_v60 = vpop.f32.mrf.mxu0  ;;  %v452_v61 = vpop.f32.mrf.mxu1 }
 0x107   :  { %v931_v62 = vpack.c.bf16 %v412_v60, %v410_v56  ;;  %v971_v63 = vpack.c.bf16 %v452_v61, %v450_v57 }
 0x109   :  { %1059 = vst [vmem:[#allocation2 + $0x38] sm:$0xff] %v931_v62  }
 0x10a   :  { %1067 = vst [vmem:[#allocation2 + $0x78] sm:$0xff] %v971_v63  }
 0x10d   :  { %v492_v0 = vpop.f32.mrf.mxu2  ;;  %v532_v1 = vpop.f32.mrf.mxu3 }
 0x10e   :  { %v1011_v2 = vpack.c.bf16 %v492_v0, %v490_v58  ;;  %v1051_v3 = vpack.c.bf16 %v532_v1, %v530_v59 }
 0x110   :  { %1075 = vst [vmem:[#allocation2 + $0xb8] sm:$0xff] %v1011_v2  }
 0x111   :  { %1083 = vst [vmem:[#allocation2 + $0xf8] sm:$0xff] %v1051_v3  }
 0x112   :  { %675 = dma.vmem_to_hbm [thread:$0]  %s668_s23, 4096, %s670_s25, [#allocation3], %s1126_s26, %s1126_s26, %s1127_s27  }
 0x113   :  { %1123 = dma.done.wait [#allocation3], 4096  }
 0x114   :  { %1124 = vsyncadd [#allocation3], 4294963200 }
 0x115   :  { %680 = vsyncpa [#allocation3], 1 }

</bundles_post_ra>
